<compile_context>
chip_gen: v7x
topology: tpu7x:2x2x1
jax: 0.10.0
libtpu: 0.0.40
codegen_flags: <defaults>
</compile_context>

<pallas_src>
import math

import jax
import jax.numpy as jnp
from jax.experimental import pallas as pl
from jax.experimental.pallas import tpu as pltpu

_LANE = 128
_SUBLANE = 8
# ~4 MiB of f32 RGBA input per grid step: 2048 rows of 128 lanes x 4 channels.
_TARGET_ROWS = 2048


def _round_up(x: int, m: int) -> int:
    return ((x + m - 1) // m) * m


def _composite_alpha_kernel(bg_ref, img_ref, out_ref):
    # bg_ref : SMEM (3,)              background RGB as f32 scalars
    # img_ref: VMEM (TB, 4, TR, 128)  RGBA tile, spatial on dense (TR, 128)
    # out_ref: VMEM (TB, 3, TR, 128)  composited RGB tile
    alpha = img_ref[:, 3, :, :]                    # (TB, TR, 128)
    for c in range(3):                             # static 3-channel unroll
        bg_c = bg_ref[c].astype(out_ref.dtype)     # scalar -> vreg broadcast
        rgb_c = img_ref[:, c, :, :]                # (TB, TR, 128)
        # FMA form of rgb*a + (1-a)*bg; full-tile dense (unmasked) store.
        out_ref[:, c, :, :] = alpha * (rgb_c - bg_c) + bg_c


def composite_alpha(img: jax.Array, background) -> jax.Array:
    """JAX/Pallas equivalent of CompositeAlpha.forward.

    img        : [..., C, H, W] with C in {3, 4}
    background : scalar or 3-element background color
    returns    : [..., 3, H, W]
    """
    assert img.ndim >= 3, "expected [..., C, H, W]"
    *lead, C, H, W = img.shape

    if C == 3:
        # Matches the PyTorch early-return path (no compute).
        return img
    assert C == 4, f"expected 3 or 4 channels, got {C}"

    # Background lives in SMEM as 3 f32 scalars (no padded VMEM tile).
    bg = jnp.asarray(background, dtype=jnp.float32).reshape(-1)
    if bg.size == 1:
        bg = jnp.broadcast_to(bg, (3,))
    assert bg.size == 3, "background must be a scalar or 3 values"

    B = int(math.prod(lead)) if lead else 1
    N = H * W
    x = img.reshape(B, 4, N)  # pure layout change for contiguous NCHW

    # Lane-dense layout: pad flattened spatial axis to a multiple of 128 and
    # fold it into dense (rows, 128) tiles; the tiny channel axis (4 in / 3
    # out) stays off the sublane/lane dims so no VMEM tile is sublane-padded.
    Np = _round_up(N, _LANE)
    if Np != N:
        x = jnp.pad(x, ((0, 0), (0, 0), (0, Np - N)))
    R = Np // _LANE
    x = x.reshape(B, 4, R, _LANE)

    # --- tile selection -----------------------------------------------------
    if R >= _TARGET_ROWS:
        TR, TB = _TARGET_ROWS, 1
    else:
        TR = R                                            # full spatial extent
        TB = max(1, min(B, _TARGET_ROWS // max(R, 1)))    # fold batch elements
    # v7x shards "parallel" grid axes across its 2 TensorCores: keep >= 2 grid
    # steps whenever the problem is divisible, so both cores get work.
    if pl.cdiv(B, TB) * pl.cdiv(R, TR) < 2:
        if B >= 2:
            TB = pl.cdiv(B, 2)
        elif R >= 2 * _SUBLANE:
            TR = _round_up(pl.cdiv(R, 2), _SUBLANE)
    grid = (pl.cdiv(B, TB), pl.cdiv(R, TR))

    # Explicit VMEM budget from the real (dense, unpadded-sublane) footprint:
    # in + out blocks, double-buffered, plus headroom.  Kept <= 40 MiB so it is
    # safe on v7x's 64 MiB physical VMEM; trivial on v5e/v6e (128 MiB).
    itemsize = jnp.dtype(img.dtype).itemsize
    in_bytes = TB * 4 * _round_up(TR, _SUBLANE) * _LANE * itemsize
    out_bytes = TB * 3 * _round_up(TR, _SUBLANE) * _LANE * itemsize
    vmem_limit = int(min(max(2 * (in_bytes + out_bytes) + (4 << 20), 16 << 20),
                         40 << 20))

    out = pl.pallas_call(
        _composite_alpha_kernel,
        out_shape=jax.ShapeDtypeStruct((B, 3, R, _LANE), img.dtype),
        grid=grid,
        in_specs=[
            # background: 3 f32 scalars, whole array in SMEM
            pl.BlockSpec(memory_space=pltpu.MemorySpace.SMEM),
            # RGBA tile: full channel extent, tiled over batch-fold & rows
            pl.BlockSpec((TB, 4, TR, _LANE), lambda b, r: (b, 0, r, 0)),
        ],
        out_specs=pl.BlockSpec((TB, 3, TR, _LANE), lambda b, r: (b, 0, r, 0)),
        compiler_params=pltpu.CompilerParams(
            dimension_semantics=("parallel", "parallel"),
            vmem_limit_bytes=vmem_limit,
        ),
    )(bg, x)

    out = out.reshape(B, 3, Np)
    if Np != N:
        out = out[:, :, :N]
    return out.reshape(*lead, 3, H, W)


def composite_alpha_ref(img: jax.Array, background) -> jax.Array:
    """Pure-JAX reference for correctness checking."""
    if img.shape[-3] == 3:
        return img
    alpha = img[..., 3:4, :, :]
    rgb = img[..., :3, :, :]
    bg = jnp.asarray(background, dtype=img.dtype).reshape(-1)
    if bg.size == 1:
        bg = jnp.broadcast_to(bg, (3,))
    bg = bg[:, None, None]
    return rgb * alpha + (1.0 - alpha) * bg


if __name__ == "__main__":
    key = jax.random.PRNGKey(0)
    background = jnp.array([0.5, 0.5, 0.5], dtype=jnp.float32)
    TOL = dict(atol=1e-5, rtol=1e-5)  # FMA form differs ~1 ulp from reference

    # Main case: [2, 4, 16, 16]
    B, C, H, W = 2, 4, 16, 16
    img = jax.random.uniform(key, (B, C, H, W), dtype=jnp.float32)
    out = jax.block_until_ready(composite_alpha(img, background))
    ref = composite_alpha_ref(img, background)
    assert out.shape == (B, 3, H, W)
    assert jnp.allclose(out, ref, **TOL), "mismatch vs reference"

    # C == 3 early-return path.
    img3 = jax.random.uniform(jax.random.PRNGKey(1), (B, 3, H, W), dtype=jnp.float32)
    out3 = jax.block_until_ready(composite_alpha(img3, background))
    assert jnp.array_equal(out3, img3)

    # Arbitrary leading dims, like the PyTorch module's [..., C, H, W].
    img5 = jax.random.uniform(jax.random.PRNGKey(2), (2, 1, 4, 16, 16), dtype=jnp.float32)
    out5 = jax.block_until_ready(composite_alpha(img5, background))
    assert out5.shape == (2, 1, 3, 16, 16)
    assert jnp.allclose(out5, composite_alpha_ref(img5, background), **TOL)

    # Spatial size not a multiple of 128 (exercises the pad path).
    imgp = jax.random.uniform(jax.random.PRNGKey(3), (2, 4, 10, 10), dtype=jnp.float32)
    outp = jax.block_until_ready(composite_alpha(imgp, background))
    assert outp.shape == (2, 3, 10, 10)
    assert jnp.allclose(outp, composite_alpha_ref(imgp, background), **TOL)

    # Non-divisible batch fold (B=3, TB=2 -> ragged boundary block).
    imgr = jax.random.uniform(jax.random.PRNGKey(4), (3, 4, 16, 16), dtype=jnp.float32)
    outr = jax.block_until_ready(composite_alpha(imgr, background))
    assert outr.shape == (3, 3, 16, 16)
    assert jnp.allclose(outr, composite_alpha_ref(imgr, background), **TOL)

    # Scalar (float) background, like CompositeAlpha(0.25).
    outs = jax.block_until_ready(composite_alpha(img, 0.25))
    assert jnp.allclose(outs, composite_alpha_ref(img, 0.25), **TOL)

    print("KERNEL_OK")
</pallas_src>

<mosaic_0001>
module attributes {stable_mosaic.version = 11 : i64} {
  func.func @_composite_alpha_kernel(%arg0: i32, %arg1: i32, %arg2: memref<3xf32, #tpu.memory_space<smem>>, %arg3: memref<1x4x2x128xf32, #tpu.memory_space<vmem>>, %arg4: memref<1x3x2x128xf32, #tpu.memory_space<vmem>>) attributes {dimension_semantics = [#tpu.dimension_semantics<parallel>, #tpu.dimension_semantics<parallel>], iteration_bounds = array<i64: 2, 1>, scalar_prefetch = 0 : i64, scratch_operands = 0 : i64, tpu.core_type = #tpu.core_type<tc>, window_params = [{transform_indices = @transform_0, window_bounds = array<i64: 3>}, {transform_indices = @transform_1, window_bounds = array<i64: 1, 4, 2, 128>}, {transform_indices = @transform_2, window_bounds = array<i64: 1, 3, 2, 128>}]} {
    %c0 = arith.constant 0 : index
    %c3 = arith.constant 3 : index
    %c0_0 = arith.constant 0 : index
    %c0_1 = arith.constant 0 : index
    %0 = vector.load %arg3[%c0, %c3, %c0_0, %c0_1] : memref<1x4x2x128xf32, #tpu.memory_space<vmem>>, vector<1x1x2x128xf32>
    %1 = vector.shape_cast %0 : vector<1x1x2x128xf32> to vector<1x2x128xf32>
    %c0_2 = arith.constant 0 : index
    %2 = memref.load %arg2[%c0_2] : memref<3xf32, #tpu.memory_space<smem>>
    %c0_3 = arith.constant 0 : index
    %c0_4 = arith.constant 0 : index
    %c0_5 = arith.constant 0 : index
    %c0_6 = arith.constant 0 : index
    %3 = vector.load %arg3[%c0_3, %c0_4, %c0_5, %c0_6] : memref<1x4x2x128xf32, #tpu.memory_space<vmem>>, vector<1x1x2x128xf32>
    %4 = vector.shape_cast %3 : vector<1x1x2x128xf32> to vector<1x2x128xf32>
    %5 = vector.broadcast %2 : f32 to vector<1x2x128xf32>
    %6 = arith.subf %4, %5 : vector<1x2x128xf32>
    %7 = arith.mulf %1, %6 : vector<1x2x128xf32>
    %8 = vector.broadcast %2 : f32 to vector<1x2x128xf32>
    %9 = arith.addf %7, %8 : vector<1x2x128xf32>
    %c0_7 = arith.constant 0 : index
    %c0_8 = arith.constant 0 : index
    %c0_9 = arith.constant 0 : index
    %c0_10 = arith.constant 0 : index
    %10 = vector.load %arg4[%c0_7, %c0_8, %c0_9, %c0_10] : memref<1x3x2x128xf32, #tpu.memory_space<vmem>>, vector<1x1x2x128xf32>
    %11 = vector.shape_cast %10 : vector<1x1x2x128xf32> to vector<1x2x128xf32>
    %12 = vector.shape_cast %9 : vector<1x2x128xf32> to vector<1x1x2x128xf32>
    tpu.vector_store %arg4[%c0_7, %c0_8, %c0_9, %c0_10], %12 {strides = array<i32>} : memref<1x3x2x128xf32, #tpu.memory_space<vmem>>, vector<1x1x2x128xf32>,
    %c1 = arith.constant 1 : index
    %13 = memref.load %arg2[%c1] : memref<3xf32, #tpu.memory_space<smem>>
    %c0_11 = arith.constant 0 : index
    %c1_12 = arith.constant 1 : index
    %c0_13 = arith.constant 0 : index
    %c0_14 = arith.constant 0 : index
    %14 = vector.load %arg3[%c0_11, %c1_12, %c0_13, %c0_14] : memref<1x4x2x128xf32, #tpu.memory_space<vmem>>, vector<1x1x2x128xf32>
    %15 = vector.shape_cast %14 : vector<1x1x2x128xf32> to vector<1x2x128xf32>
    %16 = vector.broadcast %13 : f32 to vector<1x2x128xf32>
    %17 = arith.subf %15, %16 : vector<1x2x128xf32>
    %18 = arith.mulf %1, %17 : vector<1x2x128xf32>
    %19 = vector.broadcast %13 : f32 to vector<1x2x128xf32>
    %20 = arith.addf %18, %19 : vector<1x2x128xf32>
    %c0_15 = arith.constant 0 : index
    %c1_16 = arith.constant 1 : index
    %c0_17 = arith.constant 0 : index
    %c0_18 = arith.constant 0 : index
    %21 = vector.load %arg4[%c0_15, %c1_16, %c0_17, %c0_18] : memref<1x3x2x128xf32, #tpu.memory_space<vmem>>, vector<1x1x2x128xf32>
    %22 = vector.shape_cast %21 : vector<1x1x2x128xf32> to vector<1x2x128xf32>
    %23 = vector.shape_cast %20 : vector<1x2x128xf32> to vector<1x1x2x128xf32>
    tpu.vector_store %arg4[%c0_15, %c1_16, %c0_17, %c0_18], %23 {strides = array<i32>} : memref<1x3x2x128xf32, #tpu.memory_space<vmem>>, vector<1x1x2x128xf32>,
    %c2 = arith.constant 2 : index
    %24 = memref.load %arg2[%c2] : memref<3xf32, #tpu.memory_space<smem>>
    %c0_19 = arith.constant 0 : index
    %c2_20 = arith.constant 2 : index
    %c0_21 = arith.constant 0 : index
    %c0_22 = arith.constant 0 : index
    %25 = vector.load %arg3[%c0_19, %c2_20, %c0_21, %c0_22] : memref<1x4x2x128xf32, #tpu.memory_space<vmem>>, vector<1x1x2x128xf32>
    %26 = vector.shape_cast %25 : vector<1x1x2x128xf32> to vector<1x2x128xf32>
    %27 = vector.broadcast %24 : f32 to vector<1x2x128xf32>
    %28 = arith.subf %26, %27 : vector<1x2x128xf32>
    %29 = arith.mulf %1, %28 : vector<1x2x128xf32>
    %30 = vector.broadcast %24 : f32 to vector<1x2x128xf32>
    %31 = arith.addf %29, %30 : vector<1x2x128xf32>
    %c0_23 = arith.constant 0 : index
    %c2_24 = arith.constant 2 : index
    %c0_25 = arith.constant 0 : index
    %c0_26 = arith.constant 0 : index
    %32 = vector.load %arg4[%c0_23, %c2_24, %c0_25, %c0_26] : memref<1x3x2x128xf32, #tpu.memory_space<vmem>>, vector<1x1x2x128xf32>
    %33 = vector.shape_cast %32 : vector<1x1x2x128xf32> to vector<1x2x128xf32>
    %34 = vector.shape_cast %31 : vector<1x2x128xf32> to vector<1x1x2x128xf32>
    tpu.vector_store %arg4[%c0_23, %c2_24, %c0_25, %c0_26], %34 {strides = array<i32>} : memref<1x3x2x128xf32, #tpu.memory_space<vmem>>, vector<1x1x2x128xf32>,
    return
  }
  func.func @transform_0(%arg0: i32, %arg1: i32) -> i32 {
    %c0_i32 = arith.constant 0 : i32
    %c0_i32_0 = arith.constant 0 : i32
    return %c0_i32 : i32
  }
  func.func @transform_1(%arg0: i32, %arg1: i32) -> (i32, i32, i32, i32) {
    %c0_i32 = arith.constant 0 : i32
    %c0_i32_0 = arith.constant 0 : i32
    %c0_i32_1 = arith.constant 0 : i32
    return %arg0, %c0_i32, %arg1, %c0_i32_0 : i32, i32, i32, i32
  }
  func.func @transform_2(%arg0: i32, %arg1: i32) -> (i32, i32, i32, i32) {
    %c0_i32 = arith.constant 0 : i32
    %c0_i32_0 = arith.constant 0 : i32
    %c0_i32_1 = arith.constant 0 : i32
    return %arg0, %c0_i32, %arg1, %c0_i32_0 : i32, i32, i32, i32
  }
}

</mosaic_0001>

<bundles_post_ra>
// kernel: tpu_custom_call.1
= control target key start
LH: loop header
LB: loop body
LE: loop exit
PB: predicated region body
PF: predicated region fallthrough
CT: control target
= control target key end

     0   :  { %7 = vsyncpa [#allocation5], 0  ;;  %s786_s0 = inlined_call_operand.hbm [shape: f32[3], index: 0, kind: input, shape index: {}]   ;;  %s787_s1 = inlined_call_operand.hbm [shape: f32[2,4,2,128], index: 1, kind: input, shape index: {}]   ;;  %s788_s2 = inlined_call_operand.hbm [shape: f32[2,3,2,128], index: 2, kind: output, shape index: {}]  }
   0x1   :  { %8 = vsyncpa [#allocation3], 0 }
   0x2   :  { %10 = vsyncpa [#allocation3 + $0x1], 0 }
   0x3   :  { %11 = vsyncpa [#allocation4], 0 }
   0x4   :  { %13 = vsyncpa [#allocation4 + $0x1], 0  ;;  %s584_s9 = smov 0   ;;  %s586_s10 = smov 0  }
   0x5   :  { %s588_s11 = smov 0   ;;  %s590_s12 = smov 0  }
   0x6   :  { %s592_s13 = smov 0   ;;  %s594_s14 = smov 0  }
   0x7 LB: > { %s330_s15 = sadd.s32 4294967295, %s560_s14   ;;  %s331_s16 = sadd.s32 4294967294, %s560_s14   ;;  %s560_s14 = sphi %s594_s14, %s19_s14   ;;  %s556_s13 = sphi %s592_s13, %s808_s13   ;;  %s552_s12 = sphi %s590_s12, %s807_s12   ;;  %s548_s11 = sphi %s588_s11, %s806_s11   ;;  %s544_s10 = sphi %s586_s10, %s805_s10   ;;  %s540_s9 = sphi %s584_s9, %s804_s9  }
   0x8   : > { %s61_s17 = sadd.s32 1, %s548_s11  ;;  %p68_p0 = scmp.ne.s32.totalorder %s548_s11, %s544_s10 }
   0x9   : > { %p69_p1 = scmp.eq.s32.totalorder %s560_s14, 0  ;;  %p74_p2 = scmp.ne.s32.totalorder %s544_s10, %s540_s9 }
   0xa   : > { %p622_p3 = scmp.eq.s32.totalorder %s330_s15, 0  ;;  %p100_p4 = scmp.eq.s32.totalorder %s330_s15, 1 }
   0xb   : > { %p70_p5 = por %p69_p1, %p68_p0  ;;  %p106_p6 = scmp.eq.s32.totalorder %s331_s16, 1 }
   0xc   : > { %s793_s18 = scalar_select %p622_p3, 1, 0 }
   0xd   : > { %p628_p7 = por %p622_p3, %p74_p2  ;;  %p632_p8 = por %p100_p4, %p68_p0 }
   0xe   : > { %p636_p9 = por %p106_p6, %p74_p2  ;;  %p332_p10 = scmp.ge.s32.totalorder %s560_s14, 1 }
   0xf   : > { %s794_s19 = scalar_select %p628_p7, 1, 0 }
  0x10   : > { %s795_s20 = scalar_select %p632_p8, 1, 0 }
  0x11   : > { %s796_s21 = scalar_select %p636_p9, 1, 0 }
  0x12   : > { %p113_p11 = scmp.lt.s32.totalorder %s560_s14, 3  ;;  %p375_p1 = scmp.lt.s32.totalorder %s560_s14, 2 }
  0x13   : > { %s135_s23 = sand.u32 1, %s548_s11   ;;  %s31_s25 = sadd.s32 1, %s556_s13 }
  0x14   : > { %p643_p13 = pnand %p332_p10, %p113_p11  ;;  %p651_p0 = pnand %p375_p1, %p70_p5 }
  0x15   : > { %s335_s26 = sshll.u32 %s135_s23, 3  ;;  %p33_p4 = scmp.ge.s32.totalorder %s31_s25, 2 }
  0x16   : > { %p362_p7 = pneg %p643_p13  ;;  %s431_s29 = scalar_lea.hbm %s786_s0, 16 }
  0x17   : > { %p432_p6 = scmp.ne.s32.totalorder %s786_s0, %s431_s29  ;;  %p438_p5 = scmp.lt.u32.totalorder %s431_s29, %s786_s0 }
  0x18   : > { %p363_p2 = pnand %p362_p7, %p622_p3 }
  0x1a   : > { %p433_p10 = pneg %p363_p2 }
  0x1c   : > { %p434_p11 = pnand %p433_p10, %p432_p6 }
  0x1e   : > { %p435_p12 = pneg %p434_p11 }
  0x20   : > { %p440_p1 = pnand %p438_p5, %p435_p12 }
  0x22   : > { %443 = shalt.err (!%p440_p1)
}
  0x23   : > { %s562_s6 = smov [#allocation2]   ;;  %s810_s25 = smov (%p33_p4, %s31_s25), 0 }
  0x24   : > { %365 = dma.hbm_to_smem (!%p363_p2), %s786_s0, 16, %s562_s6, [#allocation5]  }
  0x25   : > { %s351_s15 = sshll.u32 %s556_s13, 7  ;;  %s56_s16 = ssub.s32 %s556_s13, %s810_s25 }
  0x26   : > { %s678_s29 = scalar_lea.hbm %s787_s1, %s351_s15  ;;  %p59_p7 = scmp.eq.s32.totalorder %s56_s16, 0 }
  0x27   : > { %s139_s30 = scalar_lea.vmem [#allocation6], %s335_s26  ;;  %s687_s5 = scalar_lea.sflag [#allocation3], %s135_s23 }
  0x28   : > { %s147_s3 = sshll.u32 %s139_s30, 4  ;;  %s444_s6 = scalar_lea.hbm %s678_s29, 128  ;;  %s680_s3 = int_to_ptr.vmem [resolvable:$true] %s147_s3 }
  0x29   : > { %s685_s4 = scalar_select %p59_p7, %s548_s11, %s61_s17  }
  0x2a   : > { %p445_p12 = scmp.ne.s32.totalorder %s678_s29, %s444_s6  ;;  %p446_p2 = pneg %p651_p0 }
  0x2b   : > { %s449_s26 = scalar_lea.hbm %s787_s1, 256  ;;  %p450_p10 = scmp.lt.u32.totalorder %s678_s29, %s787_s1 }
  0x2c   : > { %p447_p4 = pnand %p446_p2, %p445_p12  ;;  %p451_p11 = scmp.lt.u32.totalorder %s449_s26, %s444_s6 }
  0x2d   : > { %p453_p1 = scmp.lt.u32.totalorder %s444_s6, %s678_s29 }
  0x2e   : > { %p448_p6 = pneg %p447_p4  ;;  %p452_p5 = por %p451_p11, %p450_p10 }
  0x30   : > { %p454_p7 = por %p453_p1, %p452_p5 }
  0x32   : > { %p455_p9 = pnand %p454_p7, %p448_p6 }
  0x34   : > { %458 = shalt.err (!%p455_p9)
}
  0x35   : > { %s459_s17 = scalar_lea.vmem %s680_s3, 128  ;;  %s563_s23 = smov [#allocation6]  }
  0x36   : > { %p460_p12 = scmp.ne.s32.totalorder %s680_s3, %s459_s17  ;;  %s464_s27 = sshll.u32 %s563_s23, 4  ;;  %s465_s27 = int_to_ptr.vmem [resolvable:$false] %s464_s27 }
  0x37   : > { %s466_s28 = scalar_lea.vmem %s465_s27, 256  ;;  %p467_p3 = scmp.lt.s32.totalorder %s680_s3, %s465_s27 }
  0x38   : > { %p462_p4 = pnand %p460_p12, %p446_p2  ;;  %p468_p10 = scmp.lt.s32.totalorder %s466_s28, %s459_s17 }
  0x3a   : > { %p463_p8 = pneg %p462_p4  ;;  %p469_p11 = por %p468_p10, %p467_p3 }
  0x3c   : > { %p470_p5 = pnand %p469_p11, %p463_p8 }
  0x3e   : > { %473 = shalt.err (!%p470_p5)
}
  0x3f   : > { %s564_s30 = smov 32   ;;  %s565_s6 = smov 2  }
  0x40   : > { %369 = dma.hbm_to_vmem [thread:$0]  (!%p651_p0), %s678_s29, 128, %s680_s3, %s687_s5, %s564_s30, %s564_s30, %s565_s6  }
  0x41   : > { %159 = sbr.rel (%p643_p13) target bundleno = 108 (0x6c), region = 28  ;;  %p799_p9 = scmp.ne.s32.totalorder (!%p643_p13), %s793_s18, 0 }
  0x48   : > { %527 = dma.done.wait (%p799_p9), [#allocation5], 16  }
  0x49   : > { %529 = vsyncadd (%p799_p9), [#allocation5], 4294967280  ;;  %s722_s7 = sand.u32 1, %s544_s10   ;;  %p800_p3 = scmp.ne.s32.totalorder %s794_s19, 0 }
  0x4a   : > { %s340_s8 = sshll.u32 %s722_s7, 3  ;;  %s166_s26 = scalar_lea.sflag [#allocation3], %s722_s7 }
  0x4b   : > { %s169_s15 = scalar_lea.vmem [#allocation6], %s340_s8 }
  0x4c   : > { %531 = dma.done.wait (%p800_p3), %s166_s26, 128  }
  0x4d   : > { %533 = vsyncadd (%p800_p3), %s166_s26, 4294967168 }
  0x4e   : > { %174 = sfence }
  0x4f   : > { %s193_s22 = sld [smem:[#allocation2]]  ;;  %s342_s24 = sld [smem:[#allocation2 + $0x1]]  ;;  %v194_v0 = vld [vmem:[%s169_s15] sm:$0x3]  ;;  %v343_v1 = vld [vmem:[%s169_s15 + $0x2] sm:$0x3] }
  0x50   : > { %s352_s18 = smul.u32 6, %s722_s7  ;;  %s345_s29 = sld [smem:[#allocation2 + $0x2]]  ;;  %v341_v2 = vld [vmem:[%s169_s15 + $0x6] sm:$0x3]  ;;  %v346_v4 = vld [vmem:[%s169_s15 + $0x4] sm:$0x3] }
  0x51   : > { %s353_s5 = smul.u32 96, %s552_s12  ;;  %s219_s27 = scalar_lea.sflag [#allocation4], %s722_s7 }
  0x52   : > { %s190_s19 = scalar_lea.vmem [#allocation7], %s352_s18  ;;  %p801_p13 = scmp.ne.s32.totalorder %s795_s20, 0 }
  0x53   : > { %s233_s3 = sshll.u32 %s190_s19, 4  ;;  %s737_s23 = scalar_lea.hbm %s788_s2, %s353_s5  ;;  %s732_s3 = int_to_ptr.vmem [resolvable:$true] %s233_s3 }
  0x54   : > { %s474_s12 = scalar_lea.vmem %s732_s3, 96  ;;  %s566_s28 = smov [#allocation7]  }
  0x55   : > { %v195_v3 = vstv %s193_s22  ;;  %v203_v6 = vstv %s342_s24  ;;  %p475_p8 = scmp.ne.s32.totalorder %s732_s3, %s474_s12  ;;  %s478_s30 = sshll.u32 %s566_s28, 4  ;;  %s479_s30 = int_to_ptr.vmem [resolvable:$false] %s478_s30 }
  0x56   : > { %v196_v5 = vsub.f32 %v194_v0, %v195_v3  ;;  %v204_v7 = vsub.f32 %v343_v1, %v203_v6  ;;  %v212_v8 = vstv %s345_s29  ;;  %s480_s6 = scalar_lea.vmem %s479_s30, 192  ;;  %p481_p6 = scmp.lt.s32.totalorder %s732_s3, %s479_s30 }
  0x57   : > { %v213_v10 = vsub.f32 %v346_v4, %v212_v8  ;;  %p476_p0 = pnand %p475_p8, %p801_p13  ;;  %p482_p1 = scmp.lt.s32.totalorder %s480_s6, %s474_s12 }
  0x58   : > { %v197_v9 = vmul.f32 %v341_v2, %v196_v5  ;;  %v205_v11 = vmul.f32 %v341_v2, %v204_v7 }
  0x59   : > { %v214_v13 = vmul.f32 %v341_v2, %v213_v10  ;;  %p477_p2 = pneg %p476_p0  ;;  %p483_p7 = por %p482_p1, %p481_p6 }
  0x5a   : > { %v198_v12 = vadd.f32 %v197_v9, %v195_v3  ;;  %v206_v14 = vadd.f32 %v205_v11, %v203_v6 }
  0x5b   : > { %v215_v15 = vadd.f32 %v214_v13, %v212_v8  ;;  %p484_p12 = pnand %p483_p7, %p477_p2 }
  0x5c   : > { %199 = vst [vmem:[%s190_s19] sm:$0x3] %v198_v12  ;;  %344 = vst [vmem:[%s190_s19 + $0x2] sm:$0x3] %v206_v14 }
  0x5d   : > { %347 = vst [vmem:[%s190_s19 + $0x4] sm:$0x3] %v215_v15 }
  0x5e   : > { %487 = shalt.err (!%p484_p12)
}
  0x5f   : > { %s488_s8 = scalar_lea.hbm %s737_s23, 96  ;;  %s492_s22 = scalar_lea.hbm %s788_s2, 192 }
  0x60   : > { %p489_p4 = scmp.ne.s32.totalorder %s737_s23, %s488_s8  ;;  %p493_p5 = scmp.lt.u32.totalorder %s737_s23, %s788_s2 }
  0x61   : > { %p494_p9 = scmp.lt.u32.totalorder %s492_s22, %s488_s8  ;;  %p496_p8 = scmp.lt.u32.totalorder %s488_s8, %s737_s23 }
  0x62   : > { %p490_p10 = pnand %p489_p4, %p801_p13 }
  0x63   : > { %p495_p3 = por %p494_p9, %p493_p5 }
  0x64   : > { %p491_p11 = pneg %p490_p10 }
  0x65   : > { %p497_p0 = por %p496_p8, %p495_p3 }
  0x67   : > { %p498_p2 = pnand %p497_p0, %p491_p11 }
  0x69   : > { %501 = shalt.err (!%p498_p2)
}
  0x6a   : > { %s567_s29 = smov 32   ;;  %s568_s19 = smov 2  }
  0x6b   : > { %360 = dma.vmem_to_hbm [thread:$0]  (%p801_p13), %s732_s3, 96, %s737_s23, %s219_s27, %s567_s29, %s567_s29, %s568_s19  }
  0x6c PF: > { %s248_s5 = sand.u32 1, %s540_s9   ;;  %p802_p6 = scmp.ne.s32.totalorder %s796_s21, 0 }
  0x6d   : > { %p803_p1 = scmp.ge.s32.totalorder %s560_s14, 2  ;;  %s249_s16 = scalar_lea.sflag [#allocation4], %s248_s5 }
  0x6f   : > { %p371_p7 = pnand %p803_p1, %p802_p6 }
  0x71   : > { %535 = dma.done.wait (!%p371_p7), %s249_s16, 96  }
  0x72   : > { %537 = vsyncadd (!%p371_p7), %s249_s16, 4294967200  ;;  %s19_s14 = sadd.s32 1, %s560_s14   ;;  %s804_s9 = smov %s544_s10 }
  0x73   : > { %p16_p12 = scmp.ge.s32.totalorder %s19_s14, 4   ;;  %s805_s10 = smov %s548_s11 }
  0x74   : > { %s806_s11 = smov %s685_s4  ;;  %s807_s12 = smov %s556_s13 }
  0x75   : > { %s808_s13 = smov %s810_s25  ;;  %18 = sbr.rel (!%p16_p12) target bundleno = 7 (0x7), region = 83 }
  0x7c   :  { %254 = vsyncpa [#allocation3], 1 }
  0x7d   :  { %256 = vsyncpa [#allocation3 + $0x1], 1 }
  0x7e   :  { %257 = vsyncpa [#allocation4], 1 }
  0x7f   :  { %259 = vsyncpa [#allocation4 + $0x1], 1 }
  0x80   :  { %260 = vsyncpa [#allocation5], 1 }
  0x81   :  { %262 = vsyncpa [#allocation5 + $0x1], 1 }

</bundles_post_ra>
